<compile_context>
chip_gen: v5e
topology: v5e:2x2
jax: 0.10.0
libtpu: 0.0.40
codegen_flags: <defaults>
</compile_context>

<pallas_src>
import jax
import jax.numpy as jnp
from jax.experimental import pallas as pl
from jax.experimental.pallas import tpu as pltpu


def _round_up(a, b):
    return ((a + b - 1) // b) * b


_HEADROOM = 16 * 1024 * 1024


def _vmem_budget():
    """(physical VMEM, usable budget with headroom) — conservative fallback."""
    try:
        cap = int(pltpu.get_tpu_info().vmem_capacity_bytes)
    except Exception:
        cap = 64 * 1024 * 1024  # assume v7x-sized VMEM if the query fails
    return cap, max(cap - _HEADROOM, 32 * 1024 * 1024)


# ---------------------------------------------------------------------------
# Kernels
# ---------------------------------------------------------------------------
def _ffn_kernel_scratch(x_ref, w1_ref, b1_ref, w2_ref, b2_ref, o_ref, acc_ref):
    """Accumulate in a f32 VMEM scratch (used when the output dtype != f32)."""
    f = pl.program_id(1)

    @pl.when(f == 0)
    def _init():
        acc_ref[...] = jnp.zeros_like(acc_ref)

    # First linear on the MXU (bf16 or f32 operands, f32 accumulate) + bias+ReLU.
    h = jnp.dot(x_ref[...], w1_ref[...], preferred_element_type=jnp.float32)
    h = jnp.maximum(h + b1_ref[...], 0.0)

    # Second linear: this f-slab's contribution into the accumulator.
    acc_ref[...] += jnp.dot(h.astype(w2_ref.dtype), w2_ref[...],
                            preferred_element_type=jnp.float32)

    @pl.when(f == pl.num_programs(1) - 1)
    def _finalize():
        o_ref[...] = (acc_ref[...] + b2_ref[...]).astype(o_ref.dtype)


def _ffn_kernel_inplace(x_ref, w1_ref, b1_ref, w2_ref, b2_ref, o_ref):
    """f32 output: accumulate directly into the resident output block."""
    f = pl.program_id(1)

    @pl.when(f == 0)
    def _init():
        o_ref[...] = jnp.zeros_like(o_ref)

    h = jnp.dot(x_ref[...], w1_ref[...], preferred_element_type=jnp.float32)
    h = jnp.maximum(h + b1_ref[...], 0.0)
    o_ref[...] += jnp.dot(h.astype(w2_ref.dtype), w2_ref[...],
                          preferred_element_type=jnp.float32)

    @pl.when(f == pl.num_programs(1) - 1)
    def _finalize():
        o_ref[...] += b2_ref[...]


# ---------------------------------------------------------------------------
# One-time weight preparation (pad / transpose already done by caller / cast)
# ---------------------------------------------------------------------------
def prepare_ffn_params(w1, b1, w2, b2, *, compute_dtype=jnp.bfloat16, tf=None):
    """w1: [H, 4H] ([in,out]), b1: [4H], w2: [4H, H], b2: [H].

    Pads and casts the (static) weights once, outside the per-call hot path.
    """
    H, H4 = w1.shape
    assert w2.shape == (H4, H) and b1.shape == (H4,) and b2.shape == (H,)

    vmem_cap, vmem_budget = _vmem_budget()
    big_vmem = vmem_cap >= 100 * 1024 * 1024      # v5e/v6e (128 MiB) vs v7x (64 MiB)
    if tf is None:
        tf = 1024 if big_vmem else 512            # fewer f passes where VMEM allows

    # Balance the f tiles: waste < 128 columns per tile even if H4 % tf != 0.
    tf_eff = min(tf, _round_up(H4, 128))
    nf = -(-H4 // tf_eff)
    tf_eff = _round_up(-(-H4 // nf), 128)
    H4_pad = nf * tf_eff
    H_pad = _round_up(H, 128)                     # lane-dense output / MXU-friendly K

    def pad2(a, rows, cols):
        pr, pc = rows - a.shape[0], cols - a.shape[1]
        return a if (pr == 0 and pc == 0) else jnp.pad(a, ((0, pr), (0, pc)))

    def pad1(a, n):
        p = n - a.shape[0]
        return a if p == 0 else jnp.pad(a, (0, p))

    return dict(
        w1=pad2(w1, H_pad, H4_pad).astype(compute_dtype),
        w2=pad2(w2, H4_pad, H_pad).astype(compute_dtype),
        b1=pad1(b1, H4_pad).astype(jnp.float32).reshape(1, H4_pad),
        b2=pad1(b2, H_pad).astype(jnp.float32).reshape(1, H_pad),
        H=H, H4=H4, H_pad=H_pad, H4_pad=H4_pad, tf=tf_eff,
        compute_dtype=compute_dtype,
        vmem_budget=vmem_budget, big_vmem=big_vmem,
    )


# ---------------------------------------------------------------------------
# Forward pass
# ---------------------------------------------------------------------------
def fusion_ffn(x, params, *, tm=None):
    """x: [..., H] -> relu(x @ w1 + b1) @ w2 + b2, same leading shape."""
    lead = x.shape[:-1]
    H = params["H"]
    assert x.shape[-1] == H
    x2d = x.reshape(-1, H)
    N = x2d.shape[0]

    cdt = params["compute_dtype"]
    out_dtype = x.dtype
    H_pad, H4_pad, tf_eff = params["H_pad"], params["H4_pad"], params["tf"]
    vmem_budget, big_vmem = params["vmem_budget"], params["big_vmem"]
    nf = H4_pad // tf_eff

    use_scratch = (out_dtype != jnp.float32)      # f32 out -> accumulate in o_ref

    # Sublane packing of the compute dtype: f32 -> 8 rows, bf16 -> 16, 8-bit -> 32.
    csz = jnp.dtype(cdt).itemsize
    osz = jnp.dtype(out_dtype).itemsize
    row_align = 8 * (4 // csz)

    if tm is None:
        tm = 512 if big_vmem else 256
    tm_eff = min(tm, _round_up(N, row_align))

    wbuf = 3 if (big_vmem and nf >= 3) else 2     # weight-slab buffering depth

    def fits(tm_):
        need = (2 * tm_ * H_pad * csz                  # x tile (double-buffered)
                + wbuf * H_pad * tf_eff * csz          # W1 col slab
                + wbuf * tf_eff * H_pad * csz          # W2 row slab
                + 2 * (tf_eff + H_pad) * 4             # biases
                + 2 * tm_ * H_pad * osz                # output tile
                + (tm_ * H_pad * 4 if use_scratch else 0))
        return need <= vmem_budget

    while tm_eff > row_align and not fits(tm_eff):
        tm_eff = max(row_align, _round_up(tm_eff // 2, row_align))

    N_pad = _round_up(N, tm_eff)
    grid_m = N_pad // tm_eff
    # v7x megacore balance: prefer an even number of row tiles when >= 2.
    if grid_m >= 2 and grid_m % 2 == 1:
        grid_m += 1
        tm_eff = _round_up(-(-N // grid_m), row_align)
        N_pad = tm_eff * grid_m

    # Pad rows / hidden only when needed, then cast to the MXU compute dtype.
    pr, pc = N_pad - N, H_pad - H
    x_p = x2d if (pr == 0 and pc == 0) else jnp.pad(x2d, ((0, pr), (0, pc)))
    x_p = x_p.astype(cdt)

    def w_spec(shape, index_map):
        # Deeper buffering on the weight slabs only where VMEM clearly allows.
        if big_vmem and nf >= 3:
            try:
                return pl.BlockSpec(shape, index_map, pipeline_mode=pl.Buffered(3))
            except TypeError:
                pass
        return pl.BlockSpec(shape, index_map)

    kernel = _ffn_kernel_scratch if use_scratch else _ffn_kernel_inplace
    scratch = [pltpu.VMEM((tm_eff, H_pad), jnp.float32)] if use_scratch else []

    out_p = pl.pallas_call(
        kernel,
        out_shape=jax.ShapeDtypeStruct((N_pad, H_pad), out_dtype),
        grid_spec=pltpu.PrefetchScalarGridSpec(
            num_scalar_prefetch=0,
            grid=(grid_m, nf),
            in_specs=[
                pl.BlockSpec((tm_eff, H_pad), lambda i, f: (i, 0)),   # x rows
                w_spec((H_pad, tf_eff), lambda i, f: (0, f)),         # W1 col slab
                pl.BlockSpec((1, tf_eff), lambda i, f: (0, f)),       # b1 slab
                w_spec((tf_eff, H_pad), lambda i, f: (f, 0)),         # W2 row slab
                pl.BlockSpec((1, H_pad), lambda i, f: (0, 0)),        # b2
            ],
            out_specs=pl.BlockSpec((tm_eff, H_pad), lambda i, f: (i, 0)),
            scratch_shapes=scratch,
        ),
        compiler_params=pltpu.CompilerParams(
            dimension_semantics=("parallel", "arbitrary"),
            vmem_limit_bytes=int(vmem_budget),
        ),
    )(x_p, params["w1"], params["b1"], params["w2"], params["b2"])

    return out_p[:N, :H].reshape(*lead, H)


# ---------------------------------------------------------------------------
# Demo / correctness checks
# ---------------------------------------------------------------------------
if __name__ == "__main__":
    batch, seq, hidden = 2, 8, 32
    key = jax.random.PRNGKey(0)
    kx, kw1, kb1, kw2, kb2 = jax.random.split(key, 5)

    x = jax.random.normal(kx, (batch, seq, hidden), dtype=jnp.float32)

    # PyTorch Linear stores W as [out, in]; transpose once to [in, out].
    W1 = jax.random.normal(kw1, (hidden * 4, hidden), dtype=jnp.float32) * 0.05
    b1 = jax.random.normal(kb1, (hidden * 4,), dtype=jnp.float32) * 0.05
    W2 = jax.random.normal(kw2, (hidden, hidden * 4), dtype=jnp.float32) * 0.05
    b2 = jax.random.normal(kb2, (hidden,), dtype=jnp.float32) * 0.05
    w1_t, w2_t = W1.T, W2.T
    x2d = x.reshape(-1, hidden)

    def ref_fwd(xq, cdt, out_dtype):
        # Emulates the kernel numerics: quantized MXU operands, f32 accumulate.
        xc = xq.astype(cdt).astype(jnp.float32)
        w1c = w1_t.astype(cdt).astype(jnp.float32)
        w2c = w2_t.astype(cdt).astype(jnp.float32)
        h = jnp.maximum(xc @ w1c + b1, 0.0)
        out = h.astype(cdt).astype(jnp.float32) @ w2c + b2
        return out.astype(out_dtype)

    # 1) f32 compute path (exact), f32 output -> in-place accumulation kernel.
    params_f32 = prepare_ffn_params(w1_t, b1, w2_t, b2, compute_dtype=jnp.float32)
    out_f32 = fusion_ffn(x, params_f32)
    jax.block_until_ready(out_f32)
    ref_f32 = (jnp.maximum(x2d @ w1_t + b1, 0.0) @ w2_t + b2).reshape(x.shape)
    assert out_f32.shape == x.shape and out_f32.dtype == jnp.float32
    assert jnp.allclose(out_f32, ref_f32, atol=1e-4, rtol=1e-4), "f32 path mismatch"

    # 2) bf16 MXU path (default fast path), f32 output.
    params_bf16 = prepare_ffn_params(w1_t, b1, w2_t, b2, compute_dtype=jnp.bfloat16)
    out_bf = fusion_ffn(x, params_bf16)
    jax.block_until_ready(out_bf)
    ref_bf = ref_fwd(x2d, jnp.bfloat16, jnp.float32).reshape(x.shape)
    assert jnp.allclose(out_bf, ref_bf, atol=5e-3, rtol=5e-3), "bf16 path mismatch"
    assert jnp.allclose(out_bf, ref_f32, atol=5e-2, rtol=5e-2), "bf16 quant error too large"

    # 3) bf16 input / bf16 output -> exercises the f32-accumulator scratch kernel.
    x_bf = x.astype(jnp.bfloat16)
    out_bb = fusion_ffn(x_bf, params_bf16)
    jax.block_until_ready(out_bb)
    assert out_bb.dtype == jnp.bfloat16
    ref_bb = ref_fwd(x_bf.reshape(-1, hidden), jnp.bfloat16,
                     jnp.bfloat16).reshape(x.shape)
    assert jnp.allclose(out_bb.astype(jnp.float32), ref_bb.astype(jnp.float32),
                        atol=2e-2, rtol=2e-2), "bf16-out path mismatch"

    print("KERNEL_OK")
</pallas_src>

<mosaic_0001>
module attributes {stable_mosaic.version = 11 : i64} {
  func.func @_ffn_kernel_inplace(%arg0: i32, %arg1: i32, %arg2: memref<16x128xf32, #tpu.memory_space<vmem>>, %arg3: memref<128x128xf32, #tpu.memory_space<vmem>>, %arg4: memref<1x128xf32, #tpu.memory_space<vmem>>, %arg5: memref<128x128xf32, #tpu.memory_space<vmem>>, %arg6: memref<1x128xf32, #tpu.memory_space<vmem>>, %arg7: memref<16x128xf32, #tpu.memory_space<vmem>>) attributes {dimension_semantics = [#tpu.dimension_semantics<parallel>, #tpu.dimension_semantics<arbitrary>], iteration_bounds = array<i64: 1, 1>, scalar_prefetch = 0 : i64, scratch_operands = 0 : i64, tpu.core_type = #tpu.core_type<tc>, window_params = [{transform_indices = @transform_0, window_bounds = array<i64: 16, 128>}, {transform_indices = @transform_1, window_bounds = array<i64: 128, 128>}, {transform_indices = @transform_2, window_bounds = array<i64: 1, 128>}, {transform_indices = @transform_3, window_bounds = array<i64: 128, 128>}, {pipeline_mode = #tpu.pipeline_mode<synchronous>, transform_indices = @transform_4, window_bounds = array<i64: 1, 128>}, {transform_indices = @transform_5, window_bounds = array<i64: 16, 128>}]} {
    %c0_i32 = arith.constant 0 : i32
    %0 = arith.cmpi eq, %arg1, %c0_i32 : i32
    %1 = arith.extui %0 : i1 to i32
    %c0_i32_0 = arith.constant 0 : i32
    %2 = arith.cmpi ne, %1, %c0_i32_0 : i32
    scf.if %2 {
      %cst_16 = arith.constant 0.000000e+00 : f32
      %19 = vector.broadcast %cst_16 : f32 to vector<16x128xf32>
      %c0_17 = arith.constant 0 : index
      %c0_18 = arith.constant 0 : index
      %20 = vector.load %arg7[%c0_17, %c0_18] : memref<16x128xf32, #tpu.memory_space<vmem>>, vector<16x128xf32>
      tpu.vector_store %arg7[%c0_17, %c0_18], %19 {strides = array<i32>} : memref<16x128xf32, #tpu.memory_space<vmem>>, vector<16x128xf32>,
    } else {
    }
    %c0 = arith.constant 0 : index
    %c0_1 = arith.constant 0 : index
    %3 = vector.load %arg2[%c0, %c0_1] : memref<16x128xf32, #tpu.memory_space<vmem>>, vector<16x128xf32>
    %c0_2 = arith.constant 0 : index
    %c0_3 = arith.constant 0 : index
    %4 = vector.load %arg3[%c0_2, %c0_3] : memref<128x128xf32, #tpu.memory_space<vmem>>, vector<128x128xf32>
    %cst = arith.constant dense<0.000000e+00> : vector<16x128xf32>
    %5 = tpu.matmul %3, %4, %cst {dimension_numbers = #tpu.dot_dimension_numbers<[1], [0], [0], [1], [0, 0, 1, 1], [], []>} : vector<16x128xf32>, vector<128x128xf32>, vector<16x128xf32> -> vector<16x128xf32>
    %c0_4 = arith.constant 0 : index
    %c0_5 = arith.constant 0 : index
    %6 = vector.load %arg4[%c0_4, %c0_5] : memref<1x128xf32, #tpu.memory_space<vmem>>, vector<1x128xf32>
    %7 = vector.broadcast %6 : vector<1x128xf32> to vector<16x128xf32>
    %8 = arith.addf %5, %7 : vector<16x128xf32>
    %cst_6 = arith.constant 0.000000e+00 : f32
    %9 = vector.broadcast %cst_6 : f32 to vector<16x128xf32>
    %10 = arith.maximumf %8, %9 : vector<16x128xf32>
    %c0_7 = arith.constant 0 : index
    %c0_8 = arith.constant 0 : index
    %11 = vector.load %arg7[%c0_7, %c0_8] : memref<16x128xf32, #tpu.memory_space<vmem>>, vector<16x128xf32>
    %c0_9 = arith.constant 0 : index
    %c0_10 = arith.constant 0 : index
    %12 = vector.load %arg5[%c0_9, %c0_10] : memref<128x128xf32, #tpu.memory_space<vmem>>, vector<128x128xf32>
    %cst_11 = arith.constant dense<0.000000e+00> : vector<16x128xf32>
    %13 = tpu.matmul %10, %12, %cst_11 {dimension_numbers = #tpu.dot_dimension_numbers<[1], [0], [0], [1], [0, 0, 1, 1], [], []>} : vector<16x128xf32>, vector<128x128xf32>, vector<16x128xf32> -> vector<16x128xf32>
    %14 = arith.addf %11, %13 : vector<16x128xf32>
    %c0_12 = arith.constant 0 : index
    %c0_13 = arith.constant 0 : index
    %15 = vector.load %arg7[%c0_12, %c0_13] : memref<16x128xf32, #tpu.memory_space<vmem>>, vector<16x128xf32>
    tpu.vector_store %arg7[%c0_12, %c0_13], %14 {strides = array<i32>} : memref<16x128xf32, #tpu.memory_space<vmem>>, vector<16x128xf32>,
    %c0_i32_14 = arith.constant 0 : i32
    %16 = arith.cmpi eq, %arg1, %c0_i32_14 : i32
    %17 = arith.extui %16 : i1 to i32
    %c0_i32_15 = arith.constant 0 : i32
    %18 = arith.cmpi ne, %17, %c0_i32_15 : i32
    scf.if %18 {
      %c0_16 = arith.constant 0 : index
      %c0_17 = arith.constant 0 : index
      %19 = vector.load %arg7[%c0_16, %c0_17] : memref<16x128xf32, #tpu.memory_space<vmem>>, vector<16x128xf32>
      %c0_18 = arith.constant 0 : index
      %c0_19 = arith.constant 0 : index
      %20 = vector.load %arg6[%c0_18, %c0_19] : memref<1x128xf32, #tpu.memory_space<vmem>>, vector<1x128xf32>
      %21 = vector.broadcast %20 : vector<1x128xf32> to vector<16x128xf32>
      %22 = arith.addf %19, %21 : vector<16x128xf32>
      %c0_20 = arith.constant 0 : index
      %c0_21 = arith.constant 0 : index
      %23 = vector.load %arg7[%c0_20, %c0_21] : memref<16x128xf32, #tpu.memory_space<vmem>>, vector<16x128xf32>
      tpu.vector_store %arg7[%c0_20, %c0_21], %22 {strides = array<i32>} : memref<16x128xf32, #tpu.memory_space<vmem>>, vector<16x128xf32>,
    } else {
    }
    return
  }
  func.func @transform_0(%arg0: i32, %arg1: i32) -> (i32, i32) {
    %c0_i32 = arith.constant 0 : i32
    %c0_i32_0 = arith.constant 0 : i32
    return %arg0, %c0_i32 : i32, i32
  }
  func.func @transform_1(%arg0: i32, %arg1: i32) -> (i32, i32) {
    %c0_i32 = arith.constant 0 : i32
    %c0_i32_0 = arith.constant 0 : i32
    return %c0_i32, %arg1 : i32, i32
  }
  func.func @transform_2(%arg0: i32, %arg1: i32) -> (i32, i32) {
    %c0_i32 = arith.constant 0 : i32
    %c0_i32_0 = arith.constant 0 : i32
    return %c0_i32, %arg1 : i32, i32
  }
  func.func @transform_3(%arg0: i32, %arg1: i32) -> (i32, i32) {
    %c0_i32 = arith.constant 0 : i32
    %c0_i32_0 = arith.constant 0 : i32
    return %arg1, %c0_i32 : i32, i32
  }
  func.func @transform_4(%arg0: i32, %arg1: i32) -> (i32, i32) {
    %c0_i32 = arith.constant 0 : i32
    %c0_i32_0 = arith.constant 0 : i32
    %c0_i32_1 = arith.constant 0 : i32
    return %c0_i32, %c0_i32_0 : i32, i32
  }
  func.func @transform_5(%arg0: i32, %arg1: i32) -> (i32, i32) {
    %c0_i32 = arith.constant 0 : i32
    %c0_i32_0 = arith.constant 0 : i32
    return %arg0, %c0_i32 : i32, i32
  }
}

</mosaic_0001>

<bundles_post_ra>
// kernel: tpu_custom_call.1
= control target key start
LH: loop header
LB: loop body
LE: loop exit
PB: predicated region body
PF: predicated region fallthrough
CT: control target
= control target key end

     0   :  { %10 = vsyncpa [#allocation3], 0  ;;  %s408_s0 = inlined_call_operand.hbm [shape: f32[16,128], index: 0, kind: input, shape index: {}]   ;;  %s409_s1 = inlined_call_operand.hbm [shape: f32[128,128], index: 1, kind: input, shape index: {}]   ;;  %s410_s2 = inlined_call_operand.vmem [shape: f32[1,128], index: 2, kind: input, shape index: {}]   ;;  %s411_s3 = inlined_call_operand.hbm [shape: f32[128,128], index: 3, kind: input, shape index: {}]   ;;  %s412_s4 = inlined_call_operand.vmem [shape: f32[1,128], index: 4, kind: input, shape index: {}]   ;;  %s413_s5 = inlined_call_operand.hbm [shape: f32[16,128], index: 5, kind: output, shape index: {}]  }
   0x1   :  { %11 = vsyncpa [#allocation6], 0 }
   0x2   :  { %12 = vsyncpa [#allocation4], 0  ;;  %s30_s20 = sshll.u32 %s409_s1, 4  ;;  %s342_s21 = smov [#allocation5]   ;;  %s31_s20 = int_to_ptr.hbm [resolvable:$true] %s30_s20 }
   0x3   :  { %s32_s22 = sshll.u32 %s342_s21, 4  ;;  %s17_s25 = sshll.u32 %s408_s0, 4  ;;  %s33_s22 = int_to_ptr.vmem [resolvable:$true] %s32_s22  ;;  %s18_s25 = int_to_ptr.hbm [resolvable:$true] %s17_s25 }
   0x4   :  { %s343_s26 = smov 128   ;;  %s344_s27 = smov 8  }
   0x5   :  { %38 = dma.hbm_to_vmem [thread:$0]  %s31_s20, 2048, %s33_s22, [#allocation6], %s343_s26, %s343_s26, %s344_s27  }
   0x6   :  { %s345_s28 = smov [#allocation2]   ;;  %s45_s1 = sshll.u32 %s411_s3, 4  ;;  %s46_s1 = int_to_ptr.hbm [resolvable:$true] %s45_s1 }
   0x7   :  { %s19_s29 = sshll.u32 %s345_s28, 4  ;;  %s346_s0 = smov [#allocation7]   ;;  %s20_s29 = int_to_ptr.vmem [resolvable:$true] %s19_s29 }
   0x8   :  { %25 = dma.hbm_to_vmem [thread:$0]  %s18_s25, 256, %s20_s29, [#allocation3], %s343_s26, %s343_s26, %s344_s27  }
   0x9   :  { %s47_s7 = sshll.u32 %s346_s0, 4  ;;  %s48_s7 = int_to_ptr.vmem [resolvable:$true] %s47_s7 }
   0xa   :  { %53 = dma.hbm_to_vmem [thread:$0]  %s46_s1, 2048, %s48_s7, [#allocation6], %s343_s26, %s343_s26, %s344_s27  }
   0xb   :  { %336 = dma.done.wait [#allocation3], 256  }
   0xc   :  { %337 = vsyncadd [#allocation3], 4294967040 }
   0xd   :  { %338 = dma.done.wait [#allocation6], 4096  }
   0xe   :  { %339 = vsyncadd [#allocation6], 4294963200  ;;  %v91_v0 = vld [vmem:[#allocation5 + $0x78] sm:$0xff]  ;;  %v90_v1 = vld [vmem:[#allocation5 + $0x70] sm:$0xff]  ;;  %s347_s11 = smov [#allocation8]   ;;  %s185_s14 = sshll.u32 %s413_s5, 4  ;;  %s186_s14 = int_to_ptr.hbm [resolvable:$true] %s185_s14 }
   0xf   :  { %199 = vmatpush.msra.mxu2 %v91_v0  ;;  %96 = vmatpush.msra.mxu0 %v91_v0  ;;  %v89_v2 = vld [vmem:[#allocation5 + $0x68] sm:$0xff]  ;;  %v88_v3 = vld [vmem:[#allocation5 + $0x60] sm:$0xff]  ;;  %v87_v4 = vld [vmem:[#allocation5 + $0x58] sm:$0xff]  ;;  %s183_s12 = sshll.u32 %s347_s11, 4  ;;  %s184_s12 = int_to_ptr.vmem [resolvable:$true] %s183_s12 }
  0x10   :  { %v138_v5 = vld [vmem:[#allocation7 + $0x78] sm:$0xff]  ;;  %v137_v6 = vld [vmem:[#allocation7 + $0x70] sm:$0xff]  ;;  %v136_v8 = vld [vmem:[#allocation7 + $0x68] sm:$0xff] }
  0x11   :  { %200 = vmatpush.msra.mxu2 %v90_v1  ;;  %97 = vmatpush.msra.mxu0 %v90_v1  ;;  %v86_v7 = vld [vmem:[#allocation5 + $0x50] sm:$0xff]  ;;  %v85_v9 = vld [vmem:[#allocation5 + $0x48] sm:$0xff]  ;;  %v135_v10 = vld [vmem:[#allocation7 + $0x60] sm:$0xff] }
  0x12   :  { %215 = vmatpush.msra.mxu3 %v138_v5  ;;  %139 = vmatpush.msra.mxu1 %v138_v5  ;;  %v84_v11 = vld [vmem:[#allocation5 + $0x40] sm:$0xff]  ;;  %v134_v12 = vld [vmem:[#allocation7 + $0x58] sm:$0xff]  ;;  %v133_v14 = vld [vmem:[#allocation7 + $0x50] sm:$0xff] }
  0x13   :  { %201 = vmatpush.msra.mxu2 %v89_v2  ;;  %98 = vmatpush.msra.mxu0 %v89_v2  ;;  %v83_v13 = vld [vmem:[#allocation5 + $0x38] sm:$0xff]  ;;  %v82_v15 = vld [vmem:[#allocation5 + $0x30] sm:$0xff]  ;;  %v132_v16 = vld [vmem:[#allocation7 + $0x48] sm:$0xff] }
  0x14   :  { %216 = vmatpush.msra.mxu3 %v137_v6  ;;  %140 = vmatpush.msra.mxu1 %v137_v6  ;;  %v81_v17 = vld [vmem:[#allocation5 + $0x28] sm:$0xff]  ;;  %v131_v18 = vld [vmem:[#allocation7 + $0x40] sm:$0xff]  ;;  %v130_v20 = vld [vmem:[#allocation7 + $0x38] sm:$0xff] }
  0x15   :  { %202 = vmatpush.msra.mxu2 %v88_v3  ;;  %99 = vmatpush.msra.mxu0 %v88_v3  ;;  %v80_v19 = vld [vmem:[#allocation5 + $0x20] sm:$0xff]  ;;  %v79_v21 = vld [vmem:[#allocation5 + $0x18] sm:$0xff]  ;;  %v129_v22 = vld [vmem:[#allocation7 + $0x30] sm:$0xff] }
  0x16   :  { %217 = vmatpush.msra.mxu3 %v136_v8  ;;  %141 = vmatpush.msra.mxu1 %v136_v8  ;;  %v78_v23 = vld [vmem:[#allocation5 + $0x10] sm:$0xff]  ;;  %v128_v24 = vld [vmem:[#allocation7 + $0x28] sm:$0xff]  ;;  %v127_v26 = vld [vmem:[#allocation7 + $0x20] sm:$0xff] }
  0x17   :  { %203 = vmatpush.msra.mxu2 %v87_v4  ;;  %100 = vmatpush.msra.mxu0 %v87_v4  ;;  %v77_v25 = vld [vmem:[#allocation5 + $0x8] sm:$0xff]  ;;  %v76_v27 = vld [vmem:[#allocation5] sm:$0xff]  ;;  %v75_v28 = vld [vmem:[#allocation2 + $0x8] sm:$0xff] }
  0x18   :  { %218 = vmatpush.msra.mxu3 %v135_v10  ;;  %142 = vmatpush.msra.mxu1 %v135_v10  ;;  %v74_v29 = vld [vmem:[#allocation2] sm:$0xff]  ;;  %v126_v30 = vld [vmem:[#allocation7 + $0x18] sm:$0xff]  ;;  %v124_v32 = vld [vmem:[#allocation7 + $0x8] sm:$0xff] }
  0x19   :  { %204 = vmatpush.msra.mxu2 %v86_v7  ;;  %101 = vmatpush.msra.mxu0 %v86_v7  ;;  %v125_v31 = vld [vmem:[#allocation7 + $0x10] sm:$0xff]  ;;  %v123_v33 = vld [vmem:[#allocation7] sm:$0xff] }
  0x1a   :  { %219 = vmatpush.msra.mxu3 %v134_v12  ;;  %143 = vmatpush.msra.mxu1 %v134_v12  ;;  %v238_v34 = vld [vmem:[%s410_s2] ss:$0 sm:$0xff] }
  0x1b   :  { %205 = vmatpush.msra.mxu2 %v85_v9  ;;  %102 = vmatpush.msra.mxu0 %v85_v9  ;;  %v239_v41 = vld [vmem:[%s412_s4] ss:$0 sm:$0xff] }
  0x1c   :  { %220 = vmatpush.msra.mxu3 %v133_v14  ;;  %144 = vmatpush.msra.mxu1 %v133_v14 }
  0x1d   :  { %206 = vmatpush.msra.mxu2 %v84_v11  ;;  %103 = vmatpush.msra.mxu0 %v84_v11 }
  0x1e   :  { %221 = vmatpush.msra.mxu3 %v132_v16  ;;  %145 = vmatpush.msra.mxu1 %v132_v16 }
  0x1f   :  { %207 = vmatpush.msra.mxu2 %v83_v13  ;;  %104 = vmatpush.msra.mxu0 %v83_v13 }
  0x20   :  { %222 = vmatpush.msra.mxu3 %v131_v18  ;;  %146 = vmatpush.msra.mxu1 %v131_v18 }
  0x21   :  { %208 = vmatpush.msra.mxu2 %v82_v15  ;;  %105 = vmatpush.msra.mxu0 %v82_v15 }
  0x22   :  { %223 = vmatpush.msra.mxu3 %v130_v20  ;;  %147 = vmatpush.msra.mxu1 %v130_v20 }
  0x23   :  { %209 = vmatpush.msra.mxu2 %v81_v17  ;;  %106 = vmatpush.msra.mxu0 %v81_v17 }
  0x24   :  { %224 = vmatpush.msra.mxu3 %v129_v22  ;;  %148 = vmatpush.msra.mxu1 %v129_v22 }
  0x25   :  { %210 = vmatpush.msra.mxu2 %v80_v19  ;;  %107 = vmatpush.msra.mxu0 %v80_v19 }
  0x26   :  { %225 = vmatpush.msra.mxu3 %v128_v24  ;;  %149 = vmatpush.msra.mxu1 %v128_v24 }
  0x27   :  { %211 = vmatpush.msra.mxu2 %v79_v21  ;;  %108 = vmatpush.msra.mxu0 %v79_v21 }
  0x28   :  { %226 = vmatpush.msra.mxu3 %v127_v26  ;;  %150 = vmatpush.msra.mxu1 %v127_v26 }
  0x29   :  { %212 = vmatpush.msra.mxu2 %v78_v23  ;;  %109 = vmatpush.msra.mxu0 %v78_v23 }
  0x2a   :  { %227 = vmatpush.msra.mxu3 %v126_v30  ;;  %151 = vmatpush.msra.mxu1 %v126_v30 }
  0x2b   :  { %213 = vmatpush.msra.mxu2 %v77_v25  ;;  %110 = vmatpush.msra.mxu0 %v77_v25 }
  0x2c   :  { %228 = vmatpush.msra.mxu3 %v125_v31  ;;  %152 = vmatpush.msra.mxu1 %v125_v31 }
  0x2d   :  { %214 = vmatpush.msra.mxu2 %v76_v27  ;;  %111 = vmatpush.msra.mxu0 %v76_v27 }
  0x2e   :  { %115 = vmatmul.f32.vlgmr.msra.gmra.mxu2 %v75_v28  ;;  %112 = vmatmul.f32.vlgmr.msra.gmra.mxu0 %v74_v29 }
  0x2f   :  { %229 = vmatpush.msra.mxu3 %v124_v32  ;;  %153 = vmatpush.msra.mxu1 %v124_v32 }
  0x31   :  { %230 = vmatpush.msra.mxu3 %v123_v33  ;;  %154 = vmatpush.msra.mxu1 %v123_v33 }
  0xab   :  { %v113_v35 = vpop.f32.mrf.mxu0 }
  0xac   :  { %v114_v36 = vadd.f32 %v238_v34, %v113_v35 }
  0xae   :  { %v119_v37 = vmax.f32 %v114_v36, 0.0 }
  0xb0   :  { %155 = vmatmul.f32.vlgmr.msra.gmra.mxu1 %v119_v37 }
  0xb1   :  { %v116_v38 = vpop.f32.mrf.mxu2 }
  0xb2   :  { %v117_v39 = vadd.f32 %v238_v34, %v116_v38 }
  0xb4   :  { %v120_v40 = vmax.f32 %v117_v39, 0.0 }
  0xb6   :  { %158 = vmatmul.f32.vlgmr.msra.gmra.mxu3 %v120_v40 }
 0x12d   :  { %v156_v42 = vpop.f32.mrf.mxu1 }
 0x12e   :  { %v175_v43 = vadd.f32 %v239_v41, %v156_v42 }
 0x130   :  { %177 = vst [vmem:[#allocation8] sm:$0xff] %v175_v43 }
 0x139   :  { %v159_v44 = vpop.f32.mrf.mxu3 }
 0x13a   :  { %v176_v45 = vadd.f32 %v239_v41, %v159_v44 }
 0x13c   :  { %178 = vst [vmem:[#allocation8 + $0x8] sm:$0xff] %v176_v45 }
 0x13d   :  { %191 = dma.vmem_to_hbm [thread:$0]  %s184_s12, 256, %s186_s14, [#allocation4], %s343_s26, %s343_s26, %s344_s27  }
 0x13e   :  { %340 = dma.done.wait [#allocation4], 256  }
 0x13f   :  { %341 = vsyncadd [#allocation4], 4294967040 }
 0x140   :  { %196 = vsyncpa [#allocation3], 1 }
 0x141   :  { %197 = vsyncpa [#allocation6], 1 }
 0x142   :  { %198 = vsyncpa [#allocation4], 1 }

</bundles_post_ra>
